<compile_context>
chip_gen: v6e
topology: v6e:2x2x1
jax: 0.10.0
libtpu: 0.0.40
codegen_flags: <defaults>
</compile_context>

<pallas_src>
import jax
import jax.numpy as jnp
from jax.experimental import pallas as pl
from jax.experimental.pallas import tpu as pltpu


def _round_up(x, m):
    return ((x + m - 1) // m) * m


def _pad2(a, rows, cols):
    return jnp.pad(a, ((0, rows - a.shape[0]), (0, cols - a.shape[1])))


def _mlp_kernel(x_ref, w1_ref, b1_ref, w2_ref, b2_ref, out_ref):
    # Hidden layer: Linear (MXU, f32 accumulation) + bias + ReLU in f32.
    h = jnp.dot(x_ref[...], w1_ref[...], preferred_element_type=jnp.float32)
    h = jnp.maximum(h + b1_ref[...], 0.0)
    # Output layer: feed the MXU in the compute dtype, accumulate f32.
    logits = jnp.dot(h.astype(w2_ref.dtype), w2_ref[...],
                     preferred_element_type=jnp.float32) + b2_ref[...]
    # exp + reciprocal both issue on the (otherwise idle) EUP slot.
    out_ref[...] = jax.nn.sigmoid(logits).astype(out_ref.dtype)


def mlp_classifier_forward(x, w1, b1, w2, b2, *, tb=512,
                           compute_dtype=jnp.bfloat16):
    """Fused MLP forward: sigmoid(relu(x @ w1 + b1) @ w2 + b2).

    x : (B, D) f32, w1: (D, H), b1: (1, H), w2: (H, C), b2: (1, C)
    (weights pre-transposed relative to PyTorch's nn.Linear storage).
    Returns (B, C) f32 probabilities.
    """
    B, D = x.shape
    H = w1.shape[1]
    C = w2.shape[1]

    # Lane-dense padding: last dims -> multiples of 128 (MXU / unmasked vst).
    Dp = _round_up(D, 128)
    Hp = _round_up(H, 128)
    Cp = _round_up(C, 128)

    # Batch tile: multiple of the sublane packing for the compute dtype.
    itemsize = jnp.dtype(compute_dtype).itemsize
    min_sub = 8 if itemsize >= 4 else 16
    tb = _round_up(max(min(tb, _round_up(B, min_sub)), min_sub), min_sub)
    Bp = _round_up(B, tb)
    grid = (Bp // tb,)

    # Zero-pad params/inputs. Zero-padded hidden columns give ReLU(0)=0 and
    # zero-padded w2 rows/cols contribute nothing, so the math is unchanged.
    xp = _pad2(x, Bp, Dp).astype(compute_dtype)
    w1p = _pad2(w1, Dp, Hp).astype(compute_dtype)
    w2p = _pad2(w2, Hp, Cp).astype(compute_dtype)
    b1p = _pad2(b1, 1, Hp).astype(jnp.float32)
    b2p = _pad2(b2, 1, Cp).astype(jnp.float32)

    cost = pl.CostEstimate(
        flops=2 * Bp * (Dp * Hp + Hp * Cp),
        transcendentals=Bp * Cp,
        bytes_accessed=(Bp * Dp * itemsize           # x
                        + Dp * Hp * itemsize         # w1
                        + Hp * Cp * itemsize         # w2
                        + (Hp + Cp) * 4              # biases
                        + Bp * Cp * 4),              # output
    )

    out_padded = pl.pallas_call(
        _mlp_kernel,
        out_shape=jax.ShapeDtypeStruct((Bp, Cp), jnp.float32),
        grid_spec=pl.GridSpec(
            grid=grid,
            in_specs=[
                pl.BlockSpec((tb, Dp), lambda i: (i, 0)),   # x tile (pipelined)
                pl.BlockSpec((Dp, Hp), lambda i: (0, 0)),   # w1 (VMEM-resident)
                pl.BlockSpec((1, Hp), lambda i: (0, 0)),    # b1 (VMEM-resident)
                pl.BlockSpec((Hp, Cp), lambda i: (0, 0)),   # w2 (VMEM-resident)
                pl.BlockSpec((1, Cp), lambda i: (0, 0)),    # b2 (VMEM-resident)
            ],
            out_specs=pl.BlockSpec((tb, Cp), lambda i: (i, 0)),
        ),
        compiler_params=pltpu.CompilerParams(
            dimension_semantics=("parallel",),   # megacore split on v7x
        ),
        cost_estimate=cost,
    )(xp, w1p, b1p, w2p, b2p)

    return out_padded[:B, :C]


def init_params(key, in_features, hidden_size, class_num):
    """Deterministic PyTorch-style init: U(-1/sqrt(fan_in), 1/sqrt(fan_in))."""
    k1, k2, k3, k4 = jax.random.split(key, 4)
    bound1 = 1.0 / jnp.sqrt(jnp.float32(in_features))
    bound2 = 1.0 / jnp.sqrt(jnp.float32(hidden_size))
    w1 = jax.random.uniform(k1, (in_features, hidden_size), jnp.float32,
                            minval=-bound1, maxval=bound1)
    b1 = jax.random.uniform(k2, (1, hidden_size), jnp.float32,
                            minval=-bound1, maxval=bound1)
    w2 = jax.random.uniform(k3, (hidden_size, class_num), jnp.float32,
                            minval=-bound2, maxval=bound2)
    b2 = jax.random.uniform(k4, (1, class_num), jnp.float32,
                            minval=-bound2, maxval=bound2)
    return w1, b1, w2, b2


if __name__ == "__main__":
    # Small shapes implied by the module (MLPClassifier defaults scaled down):
    # one hidden layer of 32 units, class_num=1, batch_size=32.
    batch = 32
    in_features = 16
    hidden_size = 32
    class_num = 1

    key = jax.random.PRNGKey(0)
    kx, kp = jax.random.split(key)
    x = jax.random.normal(kx, (batch, in_features), dtype=jnp.float32)
    w1, b1, w2, b2 = init_params(kp, in_features, hidden_size, class_num)

    # Pure-JAX f32 reference.
    ref = jax.nn.sigmoid(jnp.maximum(x @ w1 + b1, 0.0) @ w2 + b2)

    # f32 compute path, small batch tile => multi-step pipelined grid.
    out_f32 = mlp_classifier_forward(x, w1, b1, w2, b2, tb=8,
                                     compute_dtype=jnp.float32)
    out_f32 = jax.block_until_ready(out_f32)
    assert out_f32.shape == (batch, class_num)
    assert jnp.allclose(out_f32, ref, atol=1e-5, rtol=1e-5)

    # bf16 MXU path (f32 accumulation) — looser tolerance.
    out_bf16 = mlp_classifier_forward(x, w1, b1, w2, b2, tb=16,
                                      compute_dtype=jnp.bfloat16)
    out_bf16 = jax.block_until_ready(out_bf16)
    assert out_bf16.shape == (batch, class_num)
    assert jnp.allclose(out_bf16, ref, atol=2e-2, rtol=2e-2)

    print("KERNEL_OK")
</pallas_src>

<mosaic_0001>
module attributes {stable_mosaic.version = 11 : i64} {
  func.func @_mlp_kernel(%arg0: i32, %arg1: memref<8x128xf32, #tpu.memory_space<vmem>>, %arg2: memref<128x128xf32, #tpu.memory_space<vmem>>, %arg3: memref<1x128xf32, #tpu.memory_space<vmem>>, %arg4: memref<128x128xf32, #tpu.memory_space<vmem>>, %arg5: memref<1x128xf32, #tpu.memory_space<vmem>>, %arg6: memref<8x128xf32, #tpu.memory_space<vmem>>) attributes {dimension_semantics = [#tpu.dimension_semantics<parallel>], iteration_bounds = array<i64: 4>, scalar_prefetch = 0 : i64, scratch_operands = 0 : i64, tpu.core_type = #tpu.core_type<tc>, window_params = [{transform_indices = @transform_0, window_bounds = array<i64: 8, 128>}, {pipeline_mode = #tpu.pipeline_mode<synchronous>, transform_indices = @transform_1, window_bounds = array<i64: 128, 128>}, {pipeline_mode = #tpu.pipeline_mode<synchronous>, transform_indices = @transform_2, window_bounds = array<i64: 1, 128>}, {pipeline_mode = #tpu.pipeline_mode<synchronous>, transform_indices = @transform_3, window_bounds = array<i64: 128, 128>}, {pipeline_mode = #tpu.pipeline_mode<synchronous>, transform_indices = @transform_4, window_bounds = array<i64: 1, 128>}, {transform_indices = @transform_5, window_bounds = array<i64: 8, 128>}]} {
    %c0 = arith.constant 0 : index
    %c0_0 = arith.constant 0 : index
    %0 = vector.load %arg1[%c0, %c0_0] : memref<8x128xf32, #tpu.memory_space<vmem>>, vector<8x128xf32>
    %c0_1 = arith.constant 0 : index
    %c0_2 = arith.constant 0 : index
    %1 = vector.load %arg2[%c0_1, %c0_2] : memref<128x128xf32, #tpu.memory_space<vmem>>, vector<128x128xf32>
    %cst = arith.constant dense<0.000000e+00> : vector<8x128xf32>
    %2 = tpu.matmul %0, %1, %cst {dimension_numbers = #tpu.dot_dimension_numbers<[1], [0], [0], [1], [0, 0, 1, 1], [], []>} : vector<8x128xf32>, vector<128x128xf32>, vector<8x128xf32> -> vector<8x128xf32>
    %c0_3 = arith.constant 0 : index
    %c0_4 = arith.constant 0 : index
    %3 = vector.load %arg3[%c0_3, %c0_4] : memref<1x128xf32, #tpu.memory_space<vmem>>, vector<1x128xf32>
    %4 = vector.broadcast %3 : vector<1x128xf32> to vector<8x128xf32>
    %5 = arith.addf %2, %4 : vector<8x128xf32>
    %cst_5 = arith.constant 0.000000e+00 : f32
    %6 = vector.broadcast %cst_5 : f32 to vector<8x128xf32>
    %7 = arith.maximumf %5, %6 : vector<8x128xf32>
    %c0_6 = arith.constant 0 : index
    %c0_7 = arith.constant 0 : index
    %8 = vector.load %arg4[%c0_6, %c0_7] : memref<128x128xf32, #tpu.memory_space<vmem>>, vector<128x128xf32>
    %cst_8 = arith.constant dense<0.000000e+00> : vector<8x128xf32>
    %9 = tpu.matmul %7, %8, %cst_8 {dimension_numbers = #tpu.dot_dimension_numbers<[1], [0], [0], [1], [0, 0, 1, 1], [], []>} : vector<8x128xf32>, vector<128x128xf32>, vector<8x128xf32> -> vector<8x128xf32>
    %c0_9 = arith.constant 0 : index
    %c0_10 = arith.constant 0 : index
    %10 = vector.load %arg5[%c0_9, %c0_10] : memref<1x128xf32, #tpu.memory_space<vmem>>, vector<1x128xf32>
    %11 = vector.broadcast %10 : vector<1x128xf32> to vector<8x128xf32>
    %12 = arith.addf %9, %11 : vector<8x128xf32>
    %13 = arith.negf %12 : vector<8x128xf32>
    %14 = math.exp %13 : vector<8x128xf32>
    %cst_11 = arith.constant 1.000000e+00 : f32
    %15 = vector.broadcast %cst_11 : f32 to vector<8x128xf32>
    %16 = arith.addf %15, %14 : vector<8x128xf32>
    %17 = arith.divf %15, %16 : vector<8x128xf32>
    %c0_12 = arith.constant 0 : index
    %c0_13 = arith.constant 0 : index
    %18 = vector.load %arg6[%c0_12, %c0_13] : memref<8x128xf32, #tpu.memory_space<vmem>>, vector<8x128xf32>
    tpu.vector_store %arg6[%c0_12, %c0_13], %17 {strides = array<i32>} : memref<8x128xf32, #tpu.memory_space<vmem>>, vector<8x128xf32>,
    return
  }
  func.func @transform_0(%arg0: i32) -> (i32, i32) {
    %c0_i32 = arith.constant 0 : i32
    %c0_i32_0 = arith.constant 0 : i32
    return %arg0, %c0_i32 : i32, i32
  }
  func.func @transform_1(%arg0: i32) -> (i32, i32) {
    %c0_i32 = arith.constant 0 : i32
    %c0_i32_0 = arith.constant 0 : i32
    %c0_i32_1 = arith.constant 0 : i32
    return %c0_i32, %c0_i32_0 : i32, i32
  }
  func.func @transform_2(%arg0: i32) -> (i32, i32) {
    %c0_i32 = arith.constant 0 : i32
    %c0_i32_0 = arith.constant 0 : i32
    %c0_i32_1 = arith.constant 0 : i32
    return %c0_i32, %c0_i32_0 : i32, i32
  }
  func.func @transform_3(%arg0: i32) -> (i32, i32) {
    %c0_i32 = arith.constant 0 : i32
    %c0_i32_0 = arith.constant 0 : i32
    %c0_i32_1 = arith.constant 0 : i32
    return %c0_i32, %c0_i32_0 : i32, i32
  }
  func.func @transform_4(%arg0: i32) -> (i32, i32) {
    %c0_i32 = arith.constant 0 : i32
    %c0_i32_0 = arith.constant 0 : i32
    %c0_i32_1 = arith.constant 0 : i32
    return %c0_i32, %c0_i32_0 : i32, i32
  }
  func.func @transform_5(%arg0: i32) -> (i32, i32) {
    %c0_i32 = arith.constant 0 : i32
    %c0_i32_0 = arith.constant 0 : i32
    return %arg0, %c0_i32 : i32, i32
  }
}

</mosaic_0001>

<bundles_post_ra>
// kernel: tpu_custom_call.1
= control target key start
LH: loop header
LB: loop body
LE: loop exit
PB: predicated region body
PF: predicated region fallthrough
CT: control target
= control target key end

     0   :  { %10 = vsyncpa [#allocation3], 0  ;;  %s1169_s0 = inlined_call_operand.hbm [shape: f32[32,128], index: 0, kind: input, shape index: {}]   ;;  %s1170_s1 = inlined_call_operand.hbm [shape: f32[128,128], index: 1, kind: input, shape index: {}]   ;;  %s1171_s2 = inlined_call_operand.vmem [shape: f32[1,128], index: 2, kind: input, shape index: {}]   ;;  %s1172_s3 = inlined_call_operand.hbm [shape: f32[128,128], index: 3, kind: input, shape index: {}]   ;;  %s1173_s4 = inlined_call_operand.vmem [shape: f32[1,128], index: 4, kind: input, shape index: {}]   ;;  %s1174_s5 = inlined_call_operand.hbm [shape: f32[32,128], index: 5, kind: output, shape index: {}]  }
   0x1   :  { %12 = vsyncpa [#allocation3 + $0x1], 0 }
   0x2   :  { %13 = vsyncpa [#allocation6], 0 }
   0x3   :  { %14 = vsyncpa [#allocation4], 0 }
   0x4   :  { %16 = vsyncpa [#allocation4 + $0x1], 0  ;;  %s953_s18 = smov 0   ;;  %s955_s19 = smov 0  }
   0x5   :  { %s957_s20 = smov 0   ;;  %s959_s21 = smov 0  }
   0x6 LB: > { %s974_s22 = sadd.s32 4294967295, %s913_s21   ;;  %s567_s23 = sadd.s32 4294967294, %s913_s21   ;;  %s913_s21 = sphi %s959_s21, %s1195_s21   ;;  %s909_s20 = sphi %s957_s20, %s1194_s20   ;;  %s905_s19 = sphi %s955_s19, %s1193_s19   ;;  %s901_s18 = sphi %s953_s18, %s1192_s18  }
   0x7   : > { %p42_p0 = scmp.ne.s32.totalorder %s905_s19, %s901_s18  ;;  %p1175_p1 = scmp.eq.s32.totalorder %s974_s22, 0 }
   0x8   : > { %p156_p3 = scmp.eq.s32.totalorder %s567_s23, 3  ;;  %p568_p5 = scmp.ge.s32.totalorder %s913_s21, 1 }
   0x9   : > { %p983_p4 = por %p1175_p1, %p42_p0  ;;  %p163_p7 = scmp.lt.s32.totalorder %s913_s21, 5 }
   0xa   : > { %p988_p6 = por %p156_p3, %p42_p0  ;;  %s915_s27 = smov [#allocation5]  }
   0xb   : > { %s1179_s24 = scalar_select %p983_p4, 1, 0 }
   0xc   : > { %s1180_s25 = scalar_select %p988_p6, 1, 0 }
   0xd   : > { %p993_p8 = pnand %p568_p5, %p163_p7  ;;  %s175_s28 = sshll.u32 %s915_s27, 4  ;;  %s176_s28 = int_to_ptr.vmem [resolvable:$true] %s175_s28 }
   0xe   : > { %s916_s30 = smov [#allocation7]   ;;  %s776_s7 = scalar_lea.vmem %s176_s28, 2048 }
   0xf   : > { %s1181_s26 = scalar_select %p993_p8, 1, 0 }
  0x10   : > { %p702_p9 = pneg %p993_p8  ;;  %s191_s6 = sshll.u32 %s916_s30, 4  ;;  %s192_s6 = int_to_ptr.vmem [resolvable:$true] %s191_s6 }
  0x11   : > { %p777_p12 = scmp.ne.s32.totalorder %s176_s28, %s776_s7  ;;  %p784_p3 = scmp.lt.s32.totalorder %s176_s28, %s176_s28 }
  0x12   : > { %p1001_p10 = pnand %p702_p9, %p1175_p1  ;;  %p785_p5 = scmp.lt.s32.totalorder %s776_s7, %s776_s7 }
  0x14   : > { %p767_p11 = pneg %p1001_p10  ;;  %p786_p7 = por %p785_p5, %p784_p3 }
  0x16   : > { %p779_p13 = pnand %p777_p12, %p767_p11 }
  0x18   : > { %p780_p0 = pneg %p779_p13 }
  0x1a   : > { %p787_p9 = pnand %p786_p7, %p780_p0 }
  0x1c   : > { %790 = shalt.err (!%p787_p9)
}
  0x1d   : > { %s917_s8 = smov 128   ;;  %s918_s9 = smov 8  }
  0x1e   : > { %705 = dma.hbm_to_vmem [thread:$0]  (!%p1001_p10), %s1170_s1, 2048, %s176_s28, [#allocation6], %s917_s8, %s917_s8, %s918_s9  }
  0x1f   : > { %s802_s12 = scalar_lea.vmem %s192_s6, 2048  ;;  %p810_p2 = scmp.lt.s32.totalorder %s192_s6, %s192_s6 }
  0x20   : > { %p803_p1 = scmp.ne.s32.totalorder %s192_s6, %s802_s12  ;;  %p811_p6 = scmp.lt.s32.totalorder %s802_s12, %s802_s12 }
  0x22   : > { %p805_p12 = pnand %p803_p1, %p767_p11  ;;  %p812_p3 = por %p811_p6, %p810_p2 }
  0x24   : > { %p806_p13 = pneg %p805_p12 }
  0x26   : > { %p813_p0 = pnand %p812_p3, %p806_p13 }
  0x28   : > { %816 = shalt.err (!%p813_p0)
}
  0x29   : > { %708 = dma.hbm_to_vmem [thread:$0]  (!%p1001_p10), %s1172_s3, 2048, %s192_s6, [#allocation6], %s917_s8, %s917_s8, %s918_s9  }
  0x2a   : > { %s1024_s15 = sadd.s32 1, %s913_s21   ;;  %s29_s16 = sadd.s32 1, %s909_s20 }
  0x2b   : > { %s26_s17 = ssub.s32 %s913_s21, %s1024_s15  ;;  %p36_p1 = scmp.ne.s32.totalorder %s909_s20, %s905_s19 }
  0x2c   : > { %p27_p2 = scmp.eq.s32.totalorder %s26_s17, 0  ;;  %p37_p6 = scmp.eq.s32.totalorder %s913_s21, 0 }
  0x2d   : > { %p1183_p11 = scmp.eq.s32.totalorder %s974_s22, 3  ;;  %p719_p7 = scmp.lt.s32.totalorder %s913_s21, 4 }
  0x2e   : > { %s1040_s27 = scalar_select %p27_p2, %s909_s20, %s29_s16  }
  0x2f   : > { %p1034_p5 = por %p1183_p11, %p36_p1  ;;  %p38_p9 = por %p37_p6, %p36_p1 }
  0x30   : > { %s208_s28 = sand.u32 1, %s909_s20   ;;  %s573_s30 = sshll.u32 %s913_s21, 7 }
  0x31   : > { %s1184_s23 = scalar_select %p1034_p5, 1, 0 }
  0x32   : > { %s572_s29 = sshll.u32 %s208_s28, 3  ;;  %s1047_s8 = scalar_lea.hbm %s1169_s0, %s573_s30 }
  0x33   : > { %s212_s9 = scalar_lea.vmem [#allocation2], %s572_s29  ;;  %p1049_p10 = pnand %p719_p7, %p38_p9 }
  0x34   : > { %s219_s10 = sshll.u32 %s212_s9, 4  ;;  %s209_s12 = scalar_lea.sflag [#allocation3], %s208_s28  ;;  %s220_s10 = int_to_ptr.vmem [resolvable:$true] %s219_s10 }
  0x35   : > { %s817_s13 = scalar_lea.hbm %s1047_s8, 128  ;;  %p819_p13 = pneg %p1049_p10 }
  0x36   : > { %p818_p12 = scmp.ne.s32.totalorder %s1047_s8, %s817_s13  ;;  %s822_s17 = scalar_lea.hbm %s1169_s0, 512 }
  0x37   : > { %p823_p1 = scmp.lt.s32.totalorder %s1047_s8, %s1169_s0  ;;  %p824_p2 = scmp.lt.s32.totalorder %s822_s17, %s817_s13 }
  0x38   : > { %p820_p3 = pnand %p819_p13, %p818_p12 }
  0x39   : > { %p825_p6 = por %p824_p2, %p823_p1 }
  0x3a   : > { %p821_p0 = pneg %p820_p3 }
  0x3c   : > { %p826_p11 = pnand %p825_p6, %p821_p0 }
  0x3e   : > { %829 = shalt.err (!%p826_p11)
}
  0x3f   : > { %s830_s6 = scalar_lea.vmem %s220_s10, 128  ;;  %s919_s28 = smov [#allocation2]  }
  0x40   : > { %p831_p7 = scmp.ne.s32.totalorder %s220_s10, %s830_s6  ;;  %s835_s7 = sshll.u32 %s919_s28, 4  ;;  %s836_s7 = int_to_ptr.vmem [resolvable:$false] %s835_s7 }
  0x41   : > { %s837_s9 = scalar_lea.vmem %s836_s7, 256  ;;  %p838_p12 = scmp.lt.s32.totalorder %s220_s10, %s836_s7 }
  0x42   : > { %p833_p9 = pnand %p831_p7, %p819_p13  ;;  %p839_p3 = scmp.lt.s32.totalorder %s837_s9, %s830_s6 }
  0x44   : > { %p834_p5 = pneg %p833_p9  ;;  %p840_p4 = por %p839_p3, %p838_p12 }
  0x46   : > { %p841_p8 = pnand %p840_p4, %p834_p5 }
  0x48   : > { %844 = shalt.err (!%p841_p8)
}
  0x49   : > { %712 = dma.hbm_to_vmem [thread:$0]  (!%p1049_p10), %s1047_s8, 128, %s220_s10, %s209_s12  }
  0x4a   : > { %p1186_p0 = scmp.ne.s32.totalorder %s1181_s26, 0 }
  0x4b   : > { %s1070_s13 = sand.u32 (!%p1186_p0), 1, %s905_s19   ;;  %p1187_p4 = scmp.ne.s32.totalorder (!%p1186_p0), %s1179_s24, 0 }
  0x4c   : > { %228 = sbr.rel (%p1186_p0) target bundleno = 556 (0x22c), region = 40  ;;  %s575_s14 = sshll.u32 (!%p1186_p0), %s1070_s13, 3 }
  0x4d   : > { %s231_s16 = scalar_lea.sflag (!%p1186_p0), [#allocation3], %s1070_s13  ;;  %s1076_s17 = scalar_lea.vmem (!%p1186_p0), [#allocation2], %s575_s14 }
  0x51   : > { %888 = dma.done.wait (%p1187_p4), %s231_s16, 128  }
  0x52   : > { %890 = vsyncadd (%p1187_p4), %s231_s16, 4294967168  ;;  %p1188_p8 = scmp.eq.s32.totalorder %s974_s22, 0 }
  0x54   : > { %892 = dma.done.wait (%p1188_p8), [#allocation6], 4096   ;;  %p1189_p5 = pmov %p1188_p8 }
  0x55   : > { %v920_v0 = vmov 0.0   ;;  %vm921_vm0 = vmmov 0   ;;  %v285_v1 = vld [vmem:[#allocation5 + $0x78] sm:$0xff]  ;;  %v284_v2 = vld [vmem:[#allocation5 + $0x70] sm:$0xff]  ;;  %v283_v3 = vld [vmem:[#allocation5 + $0x68] sm:$0xff]  ;;  %s583_s11 = sshll.u32 %s974_s22, 7 }
  0x56   : > { %894 = vsyncadd (%p1189_p5), [#allocation6], 4294963200  ;;  %620 = vmatprep.subr.mxu0 %v920_v0  ;;  %652 = vmatprep.mubr.msk.f32.mxu0 %vm921_vm0, %v920_v0  ;;  %v282_v4 = vld [vmem:[#allocation5 + $0x60] sm:$0xff]  ;;  %v379_v5 = vld [vmem:[#allocation7 + $0x78] sm:$0xff]  ;;  %s268_s12 = scalar_lea.vmem [#allocation8], %s575_s14  ;;  %s1133_s28 = scalar_lea.hbm %s1174_s5, %s583_s11 }
  0x57   : > { %655 = vmatprep.subr.mxu1 %v920_v0  ;;  %687 = vmatprep.mubr.msk.f32.mxu1 %vm921_vm0, %v920_v0  ;;  %v281_v6 = vld [vmem:[#allocation5 + $0x58] sm:$0xff]  ;;  %v378_v7 = vld [vmem:[#allocation7 + $0x70] sm:$0xff]  ;;  %v377_v8 = vld [vmem:[#allocation7 + $0x68] sm:$0xff]  ;;  %s478_s30 = sshll.u32 %s268_s12, 4  ;;  %s465_s7 = scalar_lea.sflag [#allocation4], %s1070_s13  ;;  %s479_s30 = int_to_ptr.vmem [resolvable:$true] %s478_s30 }
  0x58   : > { %621 = vmatpush3.msra.mxu0 %v285_v1  ;;  %656 = vmatpush3.msra.mxu1 %v379_v5  ;;  %v280_v9 = vld [vmem:[#allocation5 + $0x50] sm:$0xff]  ;;  %v376_v10 = vld [vmem:[#allocation7 + $0x60] sm:$0xff]  ;;  %v279_v11 = vld [vmem:[#allocation5 + $0x48] sm:$0xff]  ;;  %s845_s9 = scalar_lea.vmem %s479_s30, 128  ;;  %p1190_p13 = scmp.ne.s32.totalorder %s1184_s23, 0 }
  0x59   : > { %622 = vmatprep.subr.mxu0 %v920_v0  ;;  %657 = vmatprep.subr.mxu1 %v920_v0  ;;  %v375_v12 = vld [vmem:[#allocation7 + $0x58] sm:$0xff]  ;;  %v278_v13 = vld [vmem:[#allocation5 + $0x40] sm:$0xff]  ;;  %v374_v14 = vld [vmem:[#allocation7 + $0x50] sm:$0xff]  ;;  %p846_p10 = scmp.ne.s32.totalorder %s479_s30, %s845_s9  ;;  %s922_s16 = smov [#allocation8]  }
  0x5a   : > { %623 = vmatpush3.msra.mxu0 %v284_v2  ;;  %658 = vmatpush3.msra.mxu1 %v378_v7  ;;  %v277_v15 = vld [vmem:[#allocation5 + $0x38] sm:$0xff]  ;;  %v373_v16 = vld [vmem:[#allocation7 + $0x48] sm:$0xff]  ;;  %v276_v17 = vld [vmem:[#allocation5 + $0x30] sm:$0xff] }
  0x5b   : > { %624 = vmatprep.subr.mxu0 %v920_v0  ;;  %659 = vmatprep.subr.mxu1 %v920_v0  ;;  %v372_v18 = vld [vmem:[#allocation7 + $0x40] sm:$0xff]  ;;  %v275_v19 = vld [vmem:[#allocation5 + $0x28] sm:$0xff]  ;;  %v371_v20 = vld [vmem:[#allocation7 + $0x38] sm:$0xff]  ;;  %p847_p1 = pnand %p846_p10, %p1190_p13 }
  0x5c   : > { %625 = vmatpush3.msra.mxu0 %v283_v3  ;;  %660 = vmatpush3.msra.mxu1 %v377_v8  ;;  %v274_v21 = vld [vmem:[#allocation5 + $0x20] sm:$0xff]  ;;  %v370_v22 = vld [vmem:[#allocation7 + $0x30] sm:$0xff]  ;;  %v273_v23 = vld [vmem:[#allocation5 + $0x18] sm:$0xff] }
  0x5d   : > { %626 = vmatprep.subr.mxu0 %v920_v0  ;;  %661 = vmatprep.subr.mxu1 %v920_v0  ;;  %v369_v24 = vld [vmem:[#allocation7 + $0x28] sm:$0xff]  ;;  %v272_v25 = vld [vmem:[#allocation5 + $0x10] sm:$0xff]  ;;  %v368_v26 = vld [vmem:[#allocation7 + $0x20] sm:$0xff]  ;;  %p848_p2 = pneg %p847_p1 }
  0x5e   : > { %627 = vmatpush3.msra.mxu0 %v282_v4  ;;  %662 = vmatpush3.msra.mxu1 %v376_v10  ;;  %v271_v27 = vld [vmem:[#allocation5 + $0x8] sm:$0xff]  ;;  %v367_v28 = vld [vmem:[#allocation7 + $0x18] sm:$0xff]  ;;  %v270_v29 = vld [vmem:[#allocation5] sm:$0xff] }
  0x5f   : > { %628 = vmatprep.subr.mxu0 %v920_v0  ;;  %663 = vmatprep.subr.mxu1 %v920_v0  ;;  %v269_v30 = vld [vmem:[%s1076_s17] sm:$0xff]  ;;  %v365_v32 = vld [vmem:[#allocation7 + $0x8] sm:$0xff]  ;;  %v364_v33 = vld [vmem:[#allocation7] sm:$0xff]  ;;  %s849_s17 = sshll.u32 %s922_s16, 4  ;;  %s850_s17 = int_to_ptr.vmem [resolvable:$false] %s849_s17 }
  0x60   : > { %629 = vmatpush3.msra.mxu0 %v281_v6  ;;  %664 = vmatpush3.msra.mxu1 %v375_v12  ;;  %v366_v31 = vld [vmem:[#allocation7 + $0x10] sm:$0xff]  ;;  %s851_s22 = scalar_lea.vmem %s850_s17, 256  ;;  %p852_p6 = scmp.lt.s32.totalorder %s479_s30, %s850_s17 }
  0x61   : > { %630 = vmatprep.subr.mxu0 %v920_v0  ;;  %665 = vmatprep.subr.mxu1 %v920_v0  ;;  %v579_v34 = vld [vmem:[%s1171_s2] ss:$0 sm:$0xff]  ;;  %p853_p11 = scmp.lt.s32.totalorder %s851_s22, %s845_s9 }
  0x62   : > { %631 = vmatpush3.msra.mxu0 %v280_v9  ;;  %666 = vmatpush3.msra.mxu1 %v374_v14  ;;  %v580_v39 = vld [vmem:[%s1173_s4] ss:$0 sm:$0xff] }
  0x63   : > { %632 = vmatprep.subr.mxu0 %v920_v0  ;;  %667 = vmatprep.subr.mxu1 %v920_v0  ;;  %p854_p7 = por %p853_p11, %p852_p6 }
  0x64   : > { %633 = vmatpush3.msra.mxu0 %v279_v11  ;;  %668 = vmatpush3.msra.mxu1 %v373_v16 }
  0x65   : > { %634 = vmatprep.subr.mxu0 %v920_v0  ;;  %669 = vmatprep.subr.mxu1 %v920_v0  ;;  %p855_p9 = pnand %p854_p7, %p848_p2 }
  0x66   : > { %635 = vmatpush3.msra.mxu0 %v278_v13  ;;  %670 = vmatpush3.msra.mxu1 %v372_v18 }
  0x67   : > { %636 = vmatprep.subr.mxu0 %v920_v0  ;;  %671 = vmatprep.subr.mxu1 %v920_v0 }
  0x68   : > { %637 = vmatpush3.msra.mxu0 %v277_v15  ;;  %672 = vmatpush3.msra.mxu1 %v371_v20 }
  0x69   : > { %638 = vmatprep.subr.mxu0 %v920_v0  ;;  %673 = vmatprep.subr.mxu1 %v920_v0 }
  0x6a   : > { %639 = vmatpush3.msra.mxu0 %v276_v17  ;;  %674 = vmatpush3.msra.mxu1 %v370_v22 }
  0x6b   : > { %640 = vmatprep.subr.mxu0 %v920_v0  ;;  %675 = vmatprep.subr.mxu1 %v920_v0 }
  0x6c   : > { %641 = vmatpush3.msra.mxu0 %v275_v19  ;;  %676 = vmatpush3.msra.mxu1 %v369_v24 }
  0x6d   : > { %642 = vmatprep.subr.mxu0 %v920_v0  ;;  %677 = vmatprep.subr.mxu1 %v920_v0 }
  0x6e   : > { %643 = vmatpush3.msra.mxu0 %v274_v21  ;;  %678 = vmatpush3.msra.mxu1 %v368_v26 }
  0x6f   : > { %644 = vmatprep.subr.mxu0 %v920_v0  ;;  %679 = vmatprep.subr.mxu1 %v920_v0 }
  0x70   : > { %645 = vmatpush3.msra.mxu0 %v273_v23  ;;  %680 = vmatpush3.msra.mxu1 %v367_v28 }
  0x71   : > { %646 = vmatprep.subr.mxu0 %v920_v0  ;;  %681 = vmatprep.subr.mxu1 %v920_v0 }
  0x72   : > { %647 = vmatpush3.msra.mxu0 %v272_v25  ;;  %682 = vmatpush3.msra.mxu1 %v366_v31 }
  0x73   : > { %648 = vmatprep.subr.mxu0 %v920_v0  ;;  %683 = vmatprep.subr.mxu1 %v920_v0 }
  0x74   : > { %649 = vmatpush3.msra.mxu0 %v271_v27  ;;  %684 = vmatpush3.msra.mxu1 %v365_v32 }
  0x75   : > { %650 = vmatprep.subr.mxu0 %v920_v0  ;;  %685 = vmatprep.subr.mxu1 %v920_v0 }
  0x76   : > { %651 = vmatpush3.msra.mxu0 %v270_v29  ;;  %686 = vmatpush3.msra.mxu1 %v364_v33 }
  0x77   : > { %653 = vmatmul.mubr.f32.vlgmr.msra.gmra.mxu0 %v269_v30 }
 0x137   : > { %v359_v35 = vpop.f32.mrf.mxu0 }
 0x138   : > { %v360_v36 = vadd.f32 %v579_v34, %v359_v35 }
 0x139   : > { %v654_v37 = vpop.f32.mrf.mxu0 }
 0x13a   : > { %v363_v38 = vmax.f32 %v360_v36, 0.0 }
 0x13c   : > { %688 = vmatmul.mubr.f32.vlgmr.msra.gmra.mxu1 %v363_v38 }
 0x1fc   : > { %v453_v40 = vpop.f32.mrf.mxu1 }
 0x1fd   : > { %v454_v41 = vadd.f32 %v580_v39, %v453_v40 }
 0x1fe   : > { %v689_v42 = vpop.f32.mrf.mxu1 }
 0x1ff   : > { %v581_v43 = vmul.f32 -1.442695, %v454_v41 }
 0x201   : > { %761 = vpow2.f32 %v581_v43 }
 0x20e   : > { %v762_v44 = vpop.eup %761 }
 0x20f   : > { %v460_v45 = vadd.f32 1.0, %v762_v44 }
 0x211   : > { %763 = vrcp.f32 %v460_v45 }
 0x21e   : > { %v764_v46 = vpop.eup %763 }
 0x21f   : > { %463 = vst [vmem:[%s268_s12] sm:$0xff] %v764_v46 }
 0x220   : > { %858 = shalt.err (!%p855_p9)
}
 0x221   : > { %s859_s14 = scalar_lea.hbm %s1133_s28, 128  ;;  %s863_s26 = scalar_lea.hbm %s1174_s5, 512 }
 0x222   : > { %p860_p12 = scmp.ne.s32.totalorder %s1133_s28, %s859_s14  ;;  %p864_p4 = scmp.lt.s32.totalorder %s1133_s28, %s1174_s5 }
 0x223   : > { %p865_p8 = scmp.lt.s32.totalorder %s863_s26, %s859_s14 }
 0x224   : > { %p861_p3 = pnand %p860_p12, %p1190_p13 }
 0x225   : > { %p866_p5 = por %p865_p8, %p864_p4 }
 0x226   : > { %p862_p0 = pneg %p861_p3 }
 0x228   : > { %p867_p10 = pnand %p866_p5, %p862_p0 }
 0x22a   : > { %870 = shalt.err (!%p867_p10)
}
 0x22b   : > { %700 = dma.vmem_to_hbm [thread:$0]  (%p1190_p13), %s479_s30, 128, %s1133_s28, %s465_s7  }
 0x22c PF: > { %p722_p1 = scmp.ge.s32.totalorder %s913_s21, 2  ;;  %s490_s11 = sand.u32 1, %s901_s18  }
 0x22d   : > { %p1191_p2 = scmp.ne.s32.totalorder %s1180_s25, 0  ;;  %s491_s12 = scalar_lea.sflag [#allocation4], %s490_s11 }
 0x22f   : > { %p714_p6 = pnand %p722_p1, %p1191_p2 }
 0x231   : > { %p715_p11 = pneg %p714_p6 }
 0x233   : > { %896 = dma.done.wait (%p715_p11), %s491_s12, 128  }
 0x234   : > { %898 = vsyncadd (%p715_p11), %s491_s12, 4294967168  ;;  %p19_p7 = scmp.ge.s32.totalorder %s1024_s15, 6   ;;  %s1192_s18 = smov %s905_s19 }
 0x235   : > { %s1193_s19 = smov %s909_s20  ;;  %s1194_s20 = smov %s1040_s27 }
 0x236   : > { %s1195_s21 = smov %s1024_s15  ;;  %21 = sbr.rel (!%p19_p7) target bundleno = 6 (0x6), region = 93 }
 0x23b   :  { %496 = vsyncpa [#allocation3], 1 }
 0x23c   :  { %498 = vsyncpa [#allocation3 + $0x1], 1 }
 0x23d   :  { %499 = vsyncpa [#allocation6], 1 }
 0x23e   :  { %500 = vsyncpa [#allocation4], 1 }
 0x23f   :  { %502 = vsyncpa [#allocation4 + $0x1], 1 }

</bundles_post_ra>
